<compile_context>
chip_gen: v6e
topology: v6e:2x2x1
jax: 0.10.0
libtpu: 0.0.40
codegen_flags: <defaults>
</compile_context>

<pallas_src>
import functools

import jax
import jax.numpy as jnp
from jax.experimental import pallas as pl
from jax.experimental.pallas import tpu as pltpu

_LANE = 128      # last block dim must be a multiple of the 128-wide lane axis
_SUBLANE = 8     # second-to-last block dim: multiple of 8 (f32 sublanes)


def _round_up(x, m):
    return (x + m - 1) // m * m


def _image_embed_kernel(x_ref, w_ref, pos_ref, out_ref):
    # x_ref:   (TM, Kp) bf16   patch vectors for this M-tile
    # w_ref:   (Kp, Ep) bf16   projection weight (grid-invariant, resident)
    # pos_ref: (TM, Ep) f32    position embedding + conv bias for this M-tile
    # out_ref: (TM, Ep) f32
    proj = jnp.dot(x_ref[...], w_ref[...],
                   preferred_element_type=jnp.float32)       # MXU, f32 accum
    out_ref[...] = (proj + pos_ref[...]).astype(out_ref.dtype)


def _pick_tm(m, kp, ep, block_m):
    """Largest sublane-aligned M tile <= block_m that keeps the
    double-buffered working set comfortably inside v7x's 64 MiB VMEM."""
    tm = min(block_m, _round_up(m, _SUBLANE))
    tm = _round_up(tm, _SUBLANE)
    budget = 48 * 1024 * 1024  # leave headroom below the 64 MiB physical cap

    def usage(t):
        return 2 * (t * kp * 2      # patches stream (bf16)
                    + kp * ep * 2   # weight (bf16, resident but 2 bufs alloc'd)
                    + t * ep * 4    # pos+bias stream (f32)
                    + t * ep * 4)   # output stream (f32)

    while tm > _SUBLANE and usage(tm) > budget:
        tm = max(_SUBLANE, _round_up(tm // 2, _SUBLANE))
    return tm, usage(tm)


def image_embeddings_forward(pixel_values, conv_weight, conv_bias, pos_emb,
                             patch_size, *, block_m=512,
                             compute_dtype=jnp.bfloat16):
    """Eval-mode forward of Oscar ImageEmbeddings.

    pixel_values: (B, C, H, W) float32, NCHW (PyTorch layout).
    conv_weight:  (E, C, ph, pw)   Conv2d weight with kernel == stride.
    conv_bias:    (E,)
    pos_emb:      (1, P, E)        position embeddings.
    returns:      (B, P, E)
    """
    B, C, H, W = pixel_values.shape
    ph, pw = patch_size
    gh, gw = H // ph, W // pw
    P = gh * gw                       # num_patches
    E = conv_weight.shape[0]          # hidden_size
    K = C * ph * pw
    M = B * P

    # --- plain-JAX glue (fused into the pallas input by XLA where possible) --
    # im2col: (B,C,gh,ph,gw,pw) -> (B,gh,gw,C,ph,pw) -> (M,K); contraction
    # order matches the conv-weight reshape below.
    patches = pixel_values.reshape(B, C, gh, ph, gw, pw)
    patches = patches.transpose(0, 2, 4, 1, 3, 5).reshape(M, K)
    patches = patches.astype(compute_dtype)

    w_mat = conv_weight.reshape(E, K).T.astype(compute_dtype)        # (K, E)

    # Fold conv bias into the position embedding -> single f32 epilogue add.
    pos_bias = (pos_emb.reshape(P, E).astype(jnp.float32)
                + conv_bias.astype(jnp.float32)[None, :])
    pos_bias = jnp.broadcast_to(pos_bias[None], (B, P, E)).reshape(M, E)

    # --- lane/sublane padding: all blocks dense & aligned --------------------
    kp = _round_up(K, _LANE)
    ep = _round_up(E, _LANE)
    tm, vmem_needed = _pick_tm(M, kp, ep, block_m)
    m_pad = _round_up(M, tm)
    m_blocks = m_pad // tm

    patches = jnp.pad(patches, ((0, m_pad - M), (0, kp - K)))
    w_mat = jnp.pad(w_mat, ((0, kp - K), (0, ep - E)))
    pos_bias = jnp.pad(pos_bias, ((0, m_pad - M), (0, ep - E)))

    vmem_limit = int(min(max(2 * vmem_needed, 32 * 1024 * 1024),
                         64 * 1024 * 1024))

    out_padded = pl.pallas_call(
        _image_embed_kernel,
        out_shape=jax.ShapeDtypeStruct((m_pad, ep), jnp.float32),
        grid_spec=pltpu.PrefetchScalarGridSpec(
            num_scalar_prefetch=0,
            grid=(m_blocks,),
            in_specs=[
                pl.BlockSpec((tm, kp), lambda m: (m, 0)),   # patches (stream)
                pl.BlockSpec((kp, ep), lambda m: (0, 0)),   # weight (resident)
                pl.BlockSpec((tm, ep), lambda m: (m, 0)),   # pos+bias (stream)
            ],
            out_specs=pl.BlockSpec((tm, ep), lambda m: (m, 0)),
        ),
        compiler_params=pltpu.CompilerParams(
            dimension_semantics=("parallel",),
            vmem_limit_bytes=vmem_limit,
            # Fuse the im2col transpose/pad chain (operand 0) and the batch
            # broadcast of pos+bias (operand 2) into the kernel inputs rather
            # than materializing them separately in HBM.
            allow_input_fusion=[True, False, True],
        ),
    )(patches, w_mat, pos_bias)

    # TODO(synk): training-mode dropout (hidden_dropout_prob) not applied;
    # eval-mode forward (identity dropout) is reproduced exactly.
    return out_padded[:M, :E].reshape(B, P, E).astype(pixel_values.dtype)


if __name__ == "__main__":
    # Small config consistent with the module:
    # image_size=16, patch_size=4, num_channels=4, hidden_size=32, batch=2
    image_size = 16
    patch = (4, 4)
    num_channels = 4
    hidden_size = 32
    batch = 2
    num_patches = (image_size // patch[0]) * (image_size // patch[1])  # 16

    key = jax.random.PRNGKey(0)
    k_px, k_w, k_b, k_pos = jax.random.split(key, 4)

    pixel_values = jax.random.normal(
        k_px, (batch, num_channels, image_size, image_size), dtype=jnp.float32)
    # Conv2d(num_channels, hidden_size, kernel=patch, stride=patch) params
    conv_weight = 0.02 * jax.random.normal(
        k_w, (hidden_size, num_channels, patch[0], patch[1]), dtype=jnp.float32)
    conv_bias = 0.01 * jax.random.normal(k_b, (hidden_size,), dtype=jnp.float32)
    # nn.Parameter(torch.zeros(1, num_patches, hidden)) -- small deterministic
    # values here so the add is exercised (zeros also works).
    position_embeddings = 0.02 * jax.random.normal(
        k_pos, (1, num_patches, hidden_size), dtype=jnp.float32)

    fwd = jax.jit(functools.partial(image_embeddings_forward,
                                    patch_size=patch))
    out = jax.block_until_ready(
        fwd(pixel_values, conv_weight, conv_bias, position_embeddings))

    # pure-JAX f32 reference of the same math (Conv2d + pos-emb, eval mode)
    B, C, H, W = pixel_values.shape
    gh, gw = H // patch[0], W // patch[1]
    ref_patches = pixel_values.reshape(B, C, gh, patch[0], gw, patch[1])
    ref_patches = ref_patches.transpose(0, 2, 4, 1, 3, 5).reshape(
        B, num_patches, C * patch[0] * patch[1])
    ref = (ref_patches @ conv_weight.reshape(hidden_size, -1).T
           + conv_bias[None, None, :] + position_embeddings)

    assert out.shape == (batch, num_patches, hidden_size)
    # bf16 matmul operands are a deliberate perf tradeoff -> looser tolerance
    # vs. the f32 reference (accumulation and epilogue adds stay f32).
    assert jnp.allclose(out, ref, atol=2e-2, rtol=2e-2)

    print("KERNEL_OK")
</pallas_src>

<mosaic_0001>
module attributes {stable_mosaic.version = 11 : i64} {
  func.func @_image_embed_kernel(%arg0: i32, %arg1: memref<32x128xbf16, #tpu.memory_space<vmem>>, %arg2: memref<128x128xbf16, #tpu.memory_space<vmem>>, %arg3: memref<32x128xf32, #tpu.memory_space<vmem>>, %arg4: memref<32x128xf32, #tpu.memory_space<vmem>>) attributes {dimension_semantics = [#tpu.dimension_semantics<parallel>], iteration_bounds = array<i64: 1>, scalar_prefetch = 0 : i64, scratch_operands = 0 : i64, tpu.core_type = #tpu.core_type<tc>, window_params = [{transform_indices = @transform_0, window_bounds = array<i64: 32, 128>}, {pipeline_mode = #tpu.pipeline_mode<synchronous>, transform_indices = @transform_1, window_bounds = array<i64: 128, 128>}, {transform_indices = @transform_2, window_bounds = array<i64: 32, 128>}, {transform_indices = @transform_3, window_bounds = array<i64: 32, 128>}]} {
    %c0 = arith.constant 0 : index
    %c0_0 = arith.constant 0 : index
    %0 = vector.load %arg1[%c0, %c0_0] : memref<32x128xbf16, #tpu.memory_space<vmem>>, vector<32x128xbf16>
    %c0_1 = arith.constant 0 : index
    %c0_2 = arith.constant 0 : index
    %1 = vector.load %arg2[%c0_1, %c0_2] : memref<128x128xbf16, #tpu.memory_space<vmem>>, vector<128x128xbf16>
    %cst = arith.constant dense<0.000000e+00> : vector<32x128xf32>
    %2 = tpu.matmul %0, %1, %cst {dimension_numbers = #tpu.dot_dimension_numbers<[1], [0], [0], [1], [0, 0, 1, 1], [], []>} : vector<32x128xbf16>, vector<128x128xbf16>, vector<32x128xf32> -> vector<32x128xf32>
    %c0_3 = arith.constant 0 : index
    %c0_4 = arith.constant 0 : index
    %3 = vector.load %arg3[%c0_3, %c0_4] : memref<32x128xf32, #tpu.memory_space<vmem>>, vector<32x128xf32>
    %4 = arith.addf %2, %3 : vector<32x128xf32>
    %c0_5 = arith.constant 0 : index
    %c0_6 = arith.constant 0 : index
    %5 = vector.load %arg4[%c0_5, %c0_6] : memref<32x128xf32, #tpu.memory_space<vmem>>, vector<32x128xf32>
    tpu.vector_store %arg4[%c0_5, %c0_6], %4 {strides = array<i32>} : memref<32x128xf32, #tpu.memory_space<vmem>>, vector<32x128xf32>,
    return
  }
  func.func @transform_0(%arg0: i32) -> (i32, i32) {
    %c0_i32 = arith.constant 0 : i32
    %c0_i32_0 = arith.constant 0 : i32
    return %arg0, %c0_i32 : i32, i32
  }
  func.func @transform_1(%arg0: i32) -> (i32, i32) {
    %c0_i32 = arith.constant 0 : i32
    %c0_i32_0 = arith.constant 0 : i32
    %c0_i32_1 = arith.constant 0 : i32
    return %c0_i32, %c0_i32_0 : i32, i32
  }
  func.func @transform_2(%arg0: i32) -> (i32, i32) {
    %c0_i32 = arith.constant 0 : i32
    %c0_i32_0 = arith.constant 0 : i32
    return %arg0, %c0_i32 : i32, i32
  }
  func.func @transform_3(%arg0: i32) -> (i32, i32) {
    %c0_i32 = arith.constant 0 : i32
    %c0_i32_0 = arith.constant 0 : i32
    return %arg0, %c0_i32 : i32, i32
  }
}

</mosaic_0001>

<bundles_post_ra>
// kernel: image_embeddings_forward.2
= control target key start
LH: loop header
LB: loop body
LE: loop exit
PB: predicated region body
PF: predicated region fallthrough
CT: control target
= control target key end

     0   :  { %s486_s0 = inlined_call_operand.vmem [shape: bf16[128,128], index: 0, kind: input, shape index: {}]   ;;  %s487_s1 = inlined_call_operand.vmem [shape: f32[32,32], index: 1, kind: input, shape index: {}]   ;;  %s488_s2 = inlined_call_operand.<no memory space> [shape: f32[], index: 2, kind: input, shape index: {}]   ;;  %s489_s3 = inlined_call_operand.vmem [shape: bf16[32,64], index: 3, kind: input, shape index: {}]   ;;  %s490_s4 = inlined_call_operand.<no memory space> [shape: bf16[], index: 4, kind: input, shape index: {}]   ;;  %s491_s5 = inlined_call_operand.hbm [shape: f32[32,128], index: 5, kind: output, shape index: {}]  }
   0x1   :  { %v10_v0 = vstv %s490_s4  ;;  %v431_v1 = vstv %s488_s2 }
   0x2   :  { %v11_v2 = vunpack.i.l.bf16 %v10_v0 }
   0x3   :  { %v359_v3 = vld [vmem:[%s486_s0 + $0x38] sm:$0xff]   ;;  %v35_v4 = vlaneseq  ;;  %v360_v5 = vld [vmem:[%s486_s0 + $0x30] sm:$0xff]   ;;  %v361_v6 = vld [vmem:[%s486_s0 + $0x28] sm:$0xff]  }
   0x4   :  { %335 = vmatprep.subr.bf16.mxu0 %v359_v3  ;;  %v362_v8 = vld [vmem:[%s486_s0 + $0x20] sm:$0xff]   ;;  %v310_v10 = vld [vmem:[%s489_s3 + $0x8] sm:$0xff]  }
   0x5   :  { %336 = vmatpush3.bf16.msra.mxu0 %v359_v3  ;;  %v36_v7 = vand.u32 127, %v35_v4  ;;  %v32_v9 = vld [vmem:[%s489_s3] sm:$0xff]   ;;  %v78_v13 = vunpack.c.l.bf16 %v310_v10  ;;  %v101_v14 = vunpack.c.h.bf16 %v310_v10 }
   0x6   :  { %337 = vmatprep.subr.bf16.mxu0 %v360_v5  ;;  %v33_v11 = vunpack.c.l.bf16 %v32_v9  ;;  %v55_v12 = vunpack.c.h.bf16 %v32_v9 }
   0x7   :  { %vm38_vm0 = vcmp.lt.s32.totalorder %v36_v7, 64 }
   0x9   :  { %338 = vmatpush3.bf16.msra.mxu0 %v360_v5 }
   0xa   :  { %339 = vmatprep.subr.bf16.mxu0 %v361_v6 }
   0xb   :  { %16 = vsyncpa [#allocation13], 0  ;;  %v39_v15 = vsel %vm38_vm0, %v33_v11, %v11_v2  ;;  %v61_v16 = vsel %vm38_vm0, %v55_v12, %v11_v2  ;;  %v84_v17 = vsel %vm38_vm0, %v78_v13, %v11_v2  ;;  %v107_v18 = vsel %vm38_vm0, %v101_v14, %v11_v2  ;;  %v363_v19 = vld [vmem:[%s486_s0 + $0x18] sm:$0xff]   ;;  %v364_v25 = vld [vmem:[%s486_s0 + $0x10] sm:$0xff]   ;;  %s392_s21 = smov [#allocation12]  }
   0xc   :  { %v391_v20 = vmov 0.0   ;;  %v365_v26 = vld [vmem:[%s486_s0 + $0x8] sm:$0xff]   ;;  %v366_v28 = vld [vmem:[%s486_s0] sm:$0xff]   ;;  %vm117_vm1 = vcmp.lt.s32.totalorder %v36_v7, 32  ;;  %v313_v30 = vld [vmem:[%s487_s1 + $0x10] sm:$0xff]  ;;  %s298_s22 = sshll.u32 %s392_s21, 4  ;;  %s299_s22 = int_to_ptr.vmem [resolvable:$true] %s298_s22 }
   0xd   :  { %340 = vmatpush3.bf16.msra.mxu0 %v361_v6  ;;  %v40_v21 = vpack.c.bf16 %v391_v20, %v39_v15  ;;  %v63_v22 = vpack.c.bf16 %v391_v20, %v61_v16  ;;  %v86_v23 = vpack.c.bf16 %v391_v20, %v84_v17  ;;  %v109_v24 = vpack.c.bf16 %v391_v20, %v107_v18  ;;  %v113_v31 = vld [vmem:[%s487_s1] sm:$0xff]  ;;  %v314_v33 = vld [vmem:[%s487_s1 + $0x18] sm:$0xff]  ;;  %v312_v37 = vld [vmem:[%s487_s1 + $0x8] sm:$0xff]  ;;  %s369_s1 = scalar_lea.vmem %s299_s22, 512  ;;  %p374_p1 = scmp.lt.s32.totalorder %s299_s22, %s299_s22 }
   0xe   :  { %341 = vmatprep.subr.bf16.mxu0 %v362_v8  ;;  %v139_v32 = vsel %vm117_vm1, %v313_v30, %v431_v1  ;;  %v118_v35 = vsel %vm117_vm1, %v113_v31, %v431_v1  ;;  %v150_v39 = vsel %vm117_vm1, %v314_v33, %v431_v1  ;;  %v128_v42 = vsel %vm117_vm1, %v312_v37, %v431_v1  ;;  %p370_p0 = scmp.ne.s32.totalorder %s299_s22, %s369_s1  ;;  %p375_p2 = scmp.lt.s32.totalorder %s369_s1, %s369_s1 }
   0xf   :  { %43 = vst [vmem:[#allocation14] sm:$0xf] %v40_v21  ;;  %66 = vst [vmem:[#allocation14 + $0x4] sm:$0xf] %v63_v22 }
  0x10   :  { %89 = vst [vmem:[#allocation14 + $0x8] sm:$0xf] %v86_v23  ;;  %112 = vst [vmem:[#allocation14 + $0xc] sm:$0xf] %v109_v24  ;;  %p376_p3 = por %p375_p2, %p374_p1 }
  0x11   :  { %342 = vmatpush3.bf16.msra.mxu0 %v362_v8 }
  0x12   :  { %343 = vmatprep.subr.bf16.mxu0 %v363_v19  ;;  %p377_p4 = pnand %p376_p3, %p370_p0 }
  0x15   :  { %344 = vmatpush3.bf16.msra.mxu0 %v363_v19 }
  0x16   :  { %345 = vmatprep.subr.bf16.mxu0 %v364_v25  ;;  %v367_v27 = vld [vmem:[#allocation14] sm:$0xff]  }
  0x17   :  { %351 = vmatprep.mubr.bf16.mxu0 %v367_v27  ;;  %v368_v29 = vld [vmem:[#allocation14 + $0x8] sm:$0xff]  }
  0x19   :  { %346 = vmatpush3.bf16.msra.mxu0 %v364_v25 }
  0x1a   :  { %347 = vmatprep.subr.bf16.mxu0 %v365_v26 }
  0x1d   :  { %348 = vmatpush3.bf16.msra.mxu0 %v365_v26 }
  0x1e   :  { %349 = vmatprep.subr.bf16.mxu0 %v366_v28 }
  0x21   :  { %350 = vmatpush3.bf16.msra.mxu0 %v366_v28 }
  0x24   :  { %352 = vmatmul.mubr.bf16.vlgmr.msra.gmra.mxu0 %v368_v29 }
  0xe4   :  { %v353_v34 = vpop.f32.mrf.mxu0 }
  0xe5   :  { %v283_v36 = vadd.f32 %v353_v34, %v139_v32 }
  0xe6   :  { %v274_v38 = vpop.f32.mrf.mxu0 }
  0xe7   :  { %291 = vst [vmem:[#allocation12 + $0x10] sm:$0xff] %v283_v36  ;;  %v275_v40 = vadd.f32 %v274_v38, %v118_v35 }
  0xe8   :  { %v354_v41 = vpop.f32.mrf.mxu0 }
  0xe9   :  { %289 = vst [vmem:[#allocation12] sm:$0xff] %v275_v40  ;;  %v286_v43 = vadd.f32 %v354_v41, %v150_v39 }
  0xea   :  { %v277_v44 = vpop.f32.mrf.mxu0 }
  0xeb   :  { %292 = vst [vmem:[#allocation12 + $0x18] sm:$0xff] %v286_v43  ;;  %v278_v45 = vadd.f32 %v277_v44, %v128_v42 }
  0xed   :  { %290 = vst [vmem:[#allocation12 + $0x8] sm:$0xff] %v278_v45 }
  0xee   :  { %380 = shalt.err (!%p377_p4)
}
  0xef   :  { %s393_s23 = smov 128   ;;  %s394_s24 = smov 8  }
  0xf0   :  { %304 = dma.vmem_to_hbm [thread:$0]  %s299_s22, 512, %s491_s5, [#allocation13], %s393_s23, %s393_s23, %s394_s24  }
  0xf1   :  { %389 = dma.done.wait [#allocation13], 512  }
  0xf2   :  { %390 = vsyncadd [#allocation13], 4294966784 }
  0xf3   :  { %308 = vsyncpa [#allocation13], 1 }

</bundles_post_ra>
